<compile_context>
chip_gen: v7x
topology: tpu7x:2x2x1
jax: 0.10.0
libtpu: 0.0.40
codegen_flags: <defaults>
</compile_context>

<pallas_src>
import math

import jax
import jax.numpy as jnp
from jax.experimental import pallas as pl
from jax.experimental.pallas import tpu as pltpu

_NEG_INF = -1e30  # large finite negative: avoids -inf - -inf NaNs in online softmax


def _round_up(x, m):
    return ((x + m - 1) // m) * m


def _pick_block(dim, preferred, multiple=128):
    """Largest divisor of `dim` that is <= `preferred` and a multiple of
    `multiple`; falls back to the full extent (always a legal block)."""
    if dim <= preferred:
        return dim
    blk = (preferred // multiple) * multiple
    while blk >= multiple:
        if dim % blk == 0:
            return blk
        blk -= multiple
    return dim  # NOTE: awkward S falls back to the full extent (more VMEM).


def _exp_dtype_for_device():
    """bf16 exp roughly doubles EUP throughput on v6e/v7x; keep f32 on chips
    without a bf16 EUP path (v5e and older)."""
    try:
        kind = jax.devices()[0].device_kind.lower()
    except Exception:  # pragma: no cover - defensive
        return jnp.float32
    if any(t in kind for t in ("v6", "v7", "7x")):
        return jnp.bfloat16
    return jnp.float32


# ---------------------------------------------------------------------------
# K/V projection kernel: Kp/Vp = (k|v) @ W + b, computed once per token.
# ---------------------------------------------------------------------------
def _kv_project_kernel(k_ref, v_ref, wk_ref, bk_ref, wv_ref, bv_ref,
                       kp_ref, vp_ref):
    k = k_ref[0]                                                       # (Ts, E) bf16
    v = v_ref[0]
    kp = jax.lax.dot_general(k, wk_ref[...], (((1,), (0,)), ((), ())),
                             preferred_element_type=jnp.float32) + bk_ref[...]
    vp = jax.lax.dot_general(v, wv_ref[...], (((1,), (0,)), ((), ())),
                             preferred_element_type=jnp.float32) + bv_ref[...]
    kp_ref[0] = kp.astype(kp_ref.dtype)
    vp_ref[0] = vp.astype(vp_ref.dtype)


def _project_kv(key, value, wk_p, bk_p, wv_p, bv_p, *, mxu_dtype, seq_block=512):
    B, S, E = key.shape
    Hp = wk_p.shape[1]
    Ts = _pick_block(S, seq_block, multiple=8)

    w_spec = lambda r, c: pl.BlockSpec((r, c), lambda b, s: (0, 0))
    act_spec = pl.BlockSpec((1, Ts, E), lambda b, s: (b, s, 0))
    out_spec = pl.BlockSpec((1, Ts, Hp), lambda b, s: (b, s, 0))

    return pl.pallas_call(
        _kv_project_kernel,
        out_shape=(jax.ShapeDtypeStruct((B, S, Hp), mxu_dtype),
                   jax.ShapeDtypeStruct((B, S, Hp), mxu_dtype)),
        grid_spec=pltpu.PrefetchScalarGridSpec(
            num_scalar_prefetch=0,
            grid=(B, S // Ts),
            in_specs=[act_spec, act_spec,
                      w_spec(E, Hp), w_spec(1, Hp),
                      w_spec(E, Hp), w_spec(1, Hp)],
            out_specs=(out_spec, out_spec),
        ),
        compiler_params=pltpu.CompilerParams(
            dimension_semantics=("parallel", "parallel")),
    )(key, value, wk_p, bk_p, wv_p, bv_p)


# ---------------------------------------------------------------------------
# Flash attention kernel (grid = (B, nq, nk), KV axis innermost/"arbitrary").
# ---------------------------------------------------------------------------
def _make_flash_kernel(*, mask_mode, scale, mxu_dtype, exp_dtype, tq, tk):
    assert mask_mode in ("none", "causal", "dense")

    def kernel(*refs):
        if mask_mode == "dense":
            (q_ref, kp_ref, vp_ref, mask_ref,
             wq_ref, bq_ref, wo_ref, bo_ref, o_ref,
             qp_sc, m_sc, l_sc, acc_sc) = refs
        else:
            (q_ref, kp_ref, vp_ref,
             wq_ref, bq_ref, wo_ref, bo_ref, o_ref,
             qp_sc, m_sc, l_sc, acc_sc) = refs
            mask_ref = None

        qi = pl.program_id(1)
        ki = pl.program_id(2)

        # --- init (first KV block): project the query tile once, reset accumulators.
        @pl.when(ki == 0)
        def _():
            q = q_ref[0]                                               # (Tq, E) bf16
            qp = jax.lax.dot_general(q, wq_ref[...], (((1,), (0,)), ((), ())),
                                     preferred_element_type=jnp.float32)
            qp = (qp + bq_ref[...]) * scale   # fold 1/sqrt(H) at O(Tq*Hp), not O(Tq*Tk)
            qp_sc[...] = qp.astype(mxu_dtype)
            m_sc[...] = jnp.full_like(m_sc, _NEG_INF)
            l_sc[...] = jnp.zeros_like(l_sc)
            acc_sc[...] = jnp.zeros_like(acc_sc)

        def process_block():
            kp = kp_ref[0]                                             # (Tk, Hp) bf16
            vp = vp_ref[0]
            # scores: contract trailing head dims directly (no kp.T materialized).
            s = jax.lax.dot_general(qp_sc[...], kp, (((1,), (1,)), ((), ())),
                                    preferred_element_type=jnp.float32)  # (Tq, Tk)

            keep = None
            if mask_mode == "causal":
                rows = qi * tq + jax.lax.broadcasted_iota(jnp.int32, (tq, tk), 0)
                cols = ki * tk + jax.lax.broadcasted_iota(jnp.int32, (tq, tk), 1)
                s = jnp.where(cols <= rows, s, _NEG_INF)
            elif mask_mode == "dense":
                keep = mask_ref[0] != 0        # int8 streamed mask, compared directly
                s = jnp.where(keep, s, _NEG_INF)

            # --- online softmax update (max/alpha/l kept in f32).
            m_prev = m_sc[...]
            m_new = jnp.maximum(m_prev, jnp.max(s, axis=-1, keepdims=True))
            alpha = jnp.exp(m_prev - m_new)
            p = jnp.exp((s - m_new).astype(exp_dtype))   # bf16 EUP on v6e/v7x
            if mask_mode == "dense":
                # exact zeros on masked cols so fully-masked rows keep l == 0
                # (torch nan_to_num semantics); causal rows always have >=1 col.
                p = jnp.where(keep, p, jnp.zeros_like(p))
            l_sc[...] = alpha * l_sc[...] + jnp.sum(
                p.astype(jnp.float32), axis=-1, keepdims=True)
            acc_sc[...] = alpha * acc_sc[...] + jax.lax.dot_general(
                p.astype(mxu_dtype), vp, (((1,), (0,)), ((), ())),
                preferred_element_type=jnp.float32)
            m_sc[...] = m_new

        if mask_mode == "causal":
            # Skip KV blocks strictly above the diagonal (~2x fewer MXU FLOPs /
            # exps for causal); their DMA is pruned by the clamped KV index_map.
            @pl.when(ki * tk <= qi * tq + tq - 1)
            def _():
                process_block()
        else:
            process_block()

        # --- finalize (last KV block): normalize, output projection, store.
        @pl.when(ki == pl.num_programs(2) - 1)
        def _():
            l = l_sc[...]
            inv_l = pl.reciprocal(jnp.where(l > 0.0, l, 1.0), approx=True)  # EUP
            ctx = (acc_sc[...] * inv_l).astype(mxu_dtype)  # fully-masked rows -> 0
            out = jax.lax.dot_general(ctx, wo_ref[...], (((1,), (0,)), ((), ())),
                                      preferred_element_type=jnp.float32) + bo_ref[...]
            o_ref[0] = out.astype(o_ref.dtype)

    return kernel


def decoder_attention_head(query, key, value, mask, params, *, causal=False,
                           q_block=256, kv_block=256,
                           mxu_dtype=jnp.bfloat16, exp_dtype=None):
    """query/key/value: (B, S, E); mask: (B, S, S) with 0 = masked, or None.
    If causal=True the causal mask is generated in-kernel and `mask` is ignored."""
    wq, bq, wk, bk, wv, bv, wo, bo = params
    B, S, E = query.shape
    H = wq.shape[1]
    O = wo.shape[1]

    if exp_dtype is None:
        exp_dtype = _exp_dtype_for_device()
    mask_mode = "causal" if causal else ("none" if mask is None else "dense")

    # Pad head/output dims to 128 lanes: full MXU N-dim and unmasked vector stores.
    # TODO(synk): for multi-head models, pack several heads along these 128 lanes
    # instead of zero-padding a single head_dim=16 head.
    Hp = max(_round_up(H, 128), 128)
    Op = max(_round_up(O, 128), 128)
    f32 = jnp.float32
    wq_p = jnp.pad(wq, ((0, 0), (0, Hp - H))).astype(mxu_dtype)
    wk_p = jnp.pad(wk, ((0, 0), (0, Hp - H))).astype(mxu_dtype)
    wv_p = jnp.pad(wv, ((0, 0), (0, Hp - H))).astype(mxu_dtype)
    bq_p = jnp.pad(bq, ((0, 0), (0, Hp - H))).astype(f32)
    bk_p = jnp.pad(bk, ((0, 0), (0, Hp - H))).astype(f32)
    bv_p = jnp.pad(bv, ((0, 0), (0, Hp - H))).astype(f32)
    wo_p = jnp.pad(wo, ((0, Hp - H), (0, Op - O))).astype(mxu_dtype)
    bo_p = jnp.pad(bo, ((0, 0), (0, Op - O))).astype(f32)

    # Stream bf16 activations (halves q/k/v HBM reads and the VMEM tile footprint).
    query_b = query.astype(mxu_dtype)
    key_b = key.astype(mxu_dtype)
    value_b = value.astype(mxu_dtype)

    # Hoisted K/V projections: done exactly once per token instead of once per
    # query block inside the flash loop.
    kp, vp = _project_kv(key_b, value_b, wk_p, bk_p, wv_p, bv_p, mxu_dtype=mxu_dtype)

    Tq = _pick_block(S, q_block)
    Tk = _pick_block(S, kv_block)
    nq, nk = S // Tq, S // Tk

    if mask_mode == "causal":
        def kv_index_map(b, qi, ki):
            # Clamp above-diagonal blocks to the last needed block: the block
            # index repeats, so Pallas skips the DMA (compute is skipped anyway).
            last = (qi * Tq + Tq - 1) // Tk
            return (b, jnp.minimum(ki, last), 0)
    else:
        kv_index_map = lambda b, qi, ki: (b, ki, 0)

    q_spec = pl.BlockSpec((1, Tq, E), lambda b, qi, ki: (b, qi, 0))
    kv_spec = pl.BlockSpec((1, Tk, Hp), kv_index_map)
    # Weight/bias index_maps are constant, so Pallas only DMAs them once.
    w_spec = lambda r, c: pl.BlockSpec((r, c), lambda b, qi, ki: (0, 0))

    in_specs = [q_spec, kv_spec, kv_spec]
    operands = [query_b, kp, vp]
    if mask_mode == "dense":
        mask_i8 = (mask != 0).astype(jnp.int8)     # 4x less HBM traffic than int32
        in_specs.append(pl.BlockSpec((1, Tq, Tk), lambda b, qi, ki: (b, qi, ki)))
        operands.append(mask_i8)
    in_specs += [w_spec(E, Hp), w_spec(1, Hp), w_spec(Hp, Op), w_spec(1, Op)]
    operands += [wq_p, bq_p, wo_p, bo_p]

    # Explicit VMEM budget (double-buffered tiles + persistent scratch) so the
    # scoped limit is right on v7x (64 MiB part) / v5e (16 MiB default).
    vmem_bytes = (
        2 * Tq * E * 2                                  # q tile (bf16, 2 bufs)
        + 2 * 2 * Tk * Hp * 2                           # kp, vp tiles
        + (2 * Tq * Tk if mask_mode == "dense" else 0)  # int8 mask tile
        + 2 * Tq * Op * 4                               # f32 output tile
        + 2 * (E * Hp * 2 + Hp * 4)                     # wq + bq
        + 2 * (Hp * Op * 2 + Op * 4)                    # wo + bo
        + Tq * Hp * 2 + 2 * Tq * 4 + Tq * Hp * 4)       # scratch
    vmem_limit = int(min(128 * 1024 * 1024, max(32 * 1024 * 1024, 2 * vmem_bytes)))

    kernel = _make_flash_kernel(mask_mode=mask_mode, scale=1.0 / math.sqrt(H),
                                mxu_dtype=mxu_dtype, exp_dtype=exp_dtype,
                                tq=Tq, tk=Tk)
    out = pl.pallas_call(
        kernel,
        out_shape=jax.ShapeDtypeStruct((B, S, Op), jnp.float32),
        grid_spec=pltpu.PrefetchScalarGridSpec(
            num_scalar_prefetch=0,
            grid=(B, nq, nk),
            in_specs=in_specs,
            out_specs=pl.BlockSpec((1, Tq, Op), lambda b, qi, ki: (b, qi, 0)),
            scratch_shapes=[
                pltpu.VMEM((Tq, Hp), mxu_dtype),     # cached projected query tile
                pltpu.VMEM((Tq, 1), jnp.float32),    # running max
                pltpu.VMEM((Tq, 1), jnp.float32),    # running denominator
                pltpu.VMEM((Tq, Hp), jnp.float32),   # output accumulator
            ],
        ),
        compiler_params=pltpu.CompilerParams(
            dimension_semantics=("parallel", "parallel", "arbitrary"),
            vmem_limit_bytes=vmem_limit),
    )(*operands)
    # Lane-dense padded stores; the slice back to the real width is one small
    # extra HBM copy.
    return out[..., :O]


def init_params(key, embed_dim, head_dim, output_dim):
    """Deterministic nn.Linear-style init (uniform +-1/sqrt(fan_in))."""
    def linear(k, fan_in, fan_out):
        k1, k2 = jax.random.split(k)
        bound = 1.0 / math.sqrt(fan_in)
        w = jax.random.uniform(k1, (fan_in, fan_out), jnp.float32, -bound, bound)
        b = jax.random.uniform(k2, (1, fan_out), jnp.float32, -bound, bound)
        return w, b

    kq, kk, kv, ko = jax.random.split(key, 4)
    wq, bq = linear(kq, embed_dim, head_dim)
    wk, bk = linear(kk, embed_dim, head_dim)
    wv, bv = linear(kv, embed_dim, head_dim)
    wo, bo = linear(ko, head_dim, output_dim)
    return (wq, bq, wk, bk, wv, bv, wo, bo)


def reference(query, key, value, mask, params):
    """Pure-JAX f32 reference matching the PyTorch module semantics."""
    wq, bq, wk, bk, wv, bv, wo, bo = params
    q = query @ wq + bq
    k = key @ wk + bk
    v = value @ wv + bv
    scores = jnp.einsum("bqd,bkd->bqk", q, k) / math.sqrt(q.shape[-1])
    if mask is not None:
        scores = jnp.where(mask == 0, -jnp.inf, scores)
    w = jax.nn.softmax(scores, axis=-1)
    w = jnp.nan_to_num(w)
    out = jnp.einsum("bqk,bkd->bqd", w, v)
    return out @ wo + bo


if __name__ == "__main__":
    B, S = 2, 8
    embed_dim, head_dim, output_dim = 32, 16, 32

    root = jax.random.PRNGKey(0)
    kparam, kq, kk, kv = jax.random.split(root, 4)
    params = init_params(kparam, embed_dim, head_dim, output_dim)

    query = jax.random.normal(kq, (B, S, embed_dim), jnp.float32)
    key = jax.random.normal(kk, (B, S, embed_dim), jnp.float32)
    value = jax.random.normal(kv, (B, S, embed_dim), jnp.float32)

    causal_mask = jnp.broadcast_to(jnp.tril(jnp.ones((S, S), jnp.int32)), (B, S, S))
    tol = dict(atol=5e-2, rtol=5e-2)   # bf16 MXU operands / bf16 exp tolerance

    # 1) Causal fast path: mask generated in-kernel, no (B,S,S) mask streamed.
    out_c = jax.block_until_ready(
        decoder_attention_head(query, key, value, None, params, causal=True))
    ref_c = reference(query, key, value, causal_mask, params)
    assert out_c.shape == (B, S, output_dim)
    assert jnp.allclose(out_c, ref_c, **tol), (
        f"causal mismatch, max abs err={jnp.max(jnp.abs(out_c - ref_c))}")

    # 2) Arbitrary dense int8 mask incl. a fully-masked row (nan_to_num path:
    #    that output row must equal the output bias).
    mask = causal_mask.at[1, -1, :].set(0)
    out_d = jax.block_until_ready(
        decoder_attention_head(query, key, value, mask, params))
    ref_d = reference(query, key, value, mask, params)
    assert jnp.allclose(out_d, ref_d, **tol), (
        f"dense-mask mismatch, max abs err={jnp.max(jnp.abs(out_d - ref_d))}")

    # 3) No mask at all.
    out_n = jax.block_until_ready(
        decoder_attention_head(query, key, value, None, params))
    ref_n = reference(query, key, value, None, params)
    assert jnp.allclose(out_n, ref_n, **tol), (
        f"no-mask mismatch, max abs err={jnp.max(jnp.abs(out_n - ref_n))}")

    # 4) Tiled flash path: multiple query and KV blocks; exercises causal block
    #    skipping / DMA pruning and the multi-block dense path.
    S2 = 256
    kq2, kk2, kv2 = jax.random.split(jax.random.PRNGKey(1), 3)
    query2 = jax.random.normal(kq2, (B, S2, embed_dim), jnp.float32)
    key2 = jax.random.normal(kk2, (B, S2, embed_dim), jnp.float32)
    value2 = jax.random.normal(kv2, (B, S2, embed_dim), jnp.float32)
    causal2 = jnp.broadcast_to(jnp.tril(jnp.ones((S2, S2), jnp.int32)), (B, S2, S2))

    out2c = jax.block_until_ready(
        decoder_attention_head(query2, key2, value2, None, params, causal=True,
                               q_block=128, kv_block=128))
    ref2c = reference(query2, key2, value2, causal2, params)
    assert out2c.shape == (B, S2, output_dim)
    assert jnp.allclose(out2c, ref2c, **tol), (
        f"tiled causal mismatch, max abs err={jnp.max(jnp.abs(out2c - ref2c))}")

    mask2 = causal2.at[1, -1, :].set(0)
    out2d = jax.block_until_ready(
        decoder_attention_head(query2, key2, value2, mask2, params,
                               q_block=128, kv_block=128))
    ref2d = reference(query2, key2, value2, mask2, params)
    assert jnp.allclose(out2d, ref2d, **tol), (
        f"tiled dense mismatch, max abs err={jnp.max(jnp.abs(out2d - ref2d))}")

    print("KERNEL_OK")
</pallas_src>

<mosaic_0001>
module attributes {stable_mosaic.version = 11 : i64} {
  func.func @_kv_project_kernel(%arg0: i32, %arg1: i32, %arg2: memref<1x8x32xbf16, #tpu.memory_space<vmem>>, %arg3: memref<1x8x32xbf16, #tpu.memory_space<vmem>>, %arg4: memref<32x128xbf16, #tpu.memory_space<vmem>>, %arg5: memref<1x128xf32, #tpu.memory_space<vmem>>, %arg6: memref<32x128xbf16, #tpu.memory_space<vmem>>, %arg7: memref<1x128xf32, #tpu.memory_space<vmem>>, %arg8: memref<1x8x128xbf16, #tpu.memory_space<vmem>>, %arg9: memref<1x8x128xbf16, #tpu.memory_space<vmem>>) attributes {dimension_semantics = [#tpu.dimension_semantics<parallel>, #tpu.dimension_semantics<parallel>], iteration_bounds = array<i64: 2, 1>, scalar_prefetch = 0 : i64, scratch_operands = 0 : i64, tpu.core_type = #tpu.core_type<tc>, window_params = [{transform_indices = @transform_0, window_bounds = array<i64: 1, 8, 32>}, {transform_indices = @transform_1, window_bounds = array<i64: 1, 8, 32>}, {pipeline_mode = #tpu.pipeline_mode<synchronous>, transform_indices = @transform_2, window_bounds = array<i64: 32, 128>}, {pipeline_mode = #tpu.pipeline_mode<synchronous>, transform_indices = @transform_3, window_bounds = array<i64: 1, 128>}, {pipeline_mode = #tpu.pipeline_mode<synchronous>, transform_indices = @transform_4, window_bounds = array<i64: 32, 128>}, {pipeline_mode = #tpu.pipeline_mode<synchronous>, transform_indices = @transform_5, window_bounds = array<i64: 1, 128>}, {transform_indices = @transform_6, window_bounds = array<i64: 1, 8, 128>}, {transform_indices = @transform_7, window_bounds = array<i64: 1, 8, 128>}]} {
    %c0 = arith.constant 0 : index
    %c0_0 = arith.constant 0 : index
    %c0_1 = arith.constant 0 : index
    %0 = vector.load %arg2[%c0, %c0_0, %c0_1] : memref<1x8x32xbf16, #tpu.memory_space<vmem>>, vector<1x8x32xbf16>
    %1 = vector.shape_cast %0 : vector<1x8x32xbf16> to vector<8x32xbf16>
    %c0_2 = arith.constant 0 : index
    %c0_3 = arith.constant 0 : index
    %c0_4 = arith.constant 0 : index
    %2 = vector.load %arg3[%c0_2, %c0_3, %c0_4] : memref<1x8x32xbf16, #tpu.memory_space<vmem>>, vector<1x8x32xbf16>
    %3 = vector.shape_cast %2 : vector<1x8x32xbf16> to vector<8x32xbf16>
    %c0_5 = arith.constant 0 : index
    %c0_6 = arith.constant 0 : index
    %4 = vector.load %arg4[%c0_5, %c0_6] : memref<32x128xbf16, #tpu.memory_space<vmem>>, vector<32x128xbf16>
    %cst = arith.constant dense<0.000000e+00> : vector<8x128xf32>
    %5 = tpu.matmul %1, %4, %cst {dimension_numbers = #tpu.dot_dimension_numbers<[1], [0], [0], [1], [0, 0, 1, 1], [], []>} : vector<8x32xbf16>, vector<32x128xbf16>, vector<8x128xf32> -> vector<8x128xf32>
    %c0_7 = arith.constant 0 : index
    %c0_8 = arith.constant 0 : index
    %6 = vector.load %arg5[%c0_7, %c0_8] : memref<1x128xf32, #tpu.memory_space<vmem>>, vector<1x128xf32>
    %7 = vector.broadcast %6 : vector<1x128xf32> to vector<8x128xf32>
    %8 = arith.addf %5, %7 : vector<8x128xf32>
    %c0_9 = arith.constant 0 : index
    %c0_10 = arith.constant 0 : index
    %9 = vector.load %arg6[%c0_9, %c0_10] : memref<32x128xbf16, #tpu.memory_space<vmem>>, vector<32x128xbf16>
    %cst_11 = arith.constant dense<0.000000e+00> : vector<8x128xf32>
    %10 = tpu.matmul %3, %9, %cst_11 {dimension_numbers = #tpu.dot_dimension_numbers<[1], [0], [0], [1], [0, 0, 1, 1], [], []>} : vector<8x32xbf16>, vector<32x128xbf16>, vector<8x128xf32> -> vector<8x128xf32>
    %c0_12 = arith.constant 0 : index
    %c0_13 = arith.constant 0 : index
    %11 = vector.load %arg7[%c0_12, %c0_13] : memref<1x128xf32, #tpu.memory_space<vmem>>, vector<1x128xf32>
    %12 = vector.broadcast %11 : vector<1x128xf32> to vector<8x128xf32>
    %13 = arith.addf %10, %12 : vector<8x128xf32>
    %14 = arith.truncf %8 : vector<8x128xf32> to vector<8x128xbf16>
    %c0_14 = arith.constant 0 : index
    %c0_15 = arith.constant 0 : index
    %c0_16 = arith.constant 0 : index
    %15 = vector.load %arg8[%c0_14, %c0_15, %c0_16] : memref<1x8x128xbf16, #tpu.memory_space<vmem>>, vector<1x8x128xbf16>
    %16 = vector.shape_cast %15 : vector<1x8x128xbf16> to vector<8x128xbf16>
    %17 = vector.shape_cast %14 : vector<8x128xbf16> to vector<1x8x128xbf16>
    tpu.vector_store %arg8[%c0_14, %c0_15, %c0_16], %17 {strides = array<i32>} : memref<1x8x128xbf16, #tpu.memory_space<vmem>>, vector<1x8x128xbf16>,
    %18 = arith.truncf %13 : vector<8x128xf32> to vector<8x128xbf16>
    %c0_17 = arith.constant 0 : index
    %c0_18 = arith.constant 0 : index
    %c0_19 = arith.constant 0 : index
    %19 = vector.load %arg9[%c0_17, %c0_18, %c0_19] : memref<1x8x128xbf16, #tpu.memory_space<vmem>>, vector<1x8x128xbf16>
    %20 = vector.shape_cast %19 : vector<1x8x128xbf16> to vector<8x128xbf16>
    %21 = vector.shape_cast %18 : vector<8x128xbf16> to vector<1x8x128xbf16>
    tpu.vector_store %arg9[%c0_17, %c0_18, %c0_19], %21 {strides = array<i32>} : memref<1x8x128xbf16, #tpu.memory_space<vmem>>, vector<1x8x128xbf16>,
    return
  }
  func.func @transform_0(%arg0: i32, %arg1: i32) -> (i32, i32, i32) {
    %c0_i32 = arith.constant 0 : i32
    %c0_i32_0 = arith.constant 0 : i32
    return %arg0, %arg1, %c0_i32 : i32, i32, i32
  }
  func.func @transform_1(%arg0: i32, %arg1: i32) -> (i32, i32, i32) {
    %c0_i32 = arith.constant 0 : i32
    %c0_i32_0 = arith.constant 0 : i32
    return %arg0, %arg1, %c0_i32 : i32, i32, i32
  }
  func.func @transform_2(%arg0: i32, %arg1: i32) -> (i32, i32) {
    %c0_i32 = arith.constant 0 : i32
    %c0_i32_0 = arith.constant 0 : i32
    %c0_i32_1 = arith.constant 0 : i32
    return %c0_i32, %c0_i32_0 : i32, i32
  }
  func.func @transform_3(%arg0: i32, %arg1: i32) -> (i32, i32) {
    %c0_i32 = arith.constant 0 : i32
    %c0_i32_0 = arith.constant 0 : i32
    %c0_i32_1 = arith.constant 0 : i32
    return %c0_i32, %c0_i32_0 : i32, i32
  }
  func.func @transform_4(%arg0: i32, %arg1: i32) -> (i32, i32) {
    %c0_i32 = arith.constant 0 : i32
    %c0_i32_0 = arith.constant 0 : i32
    %c0_i32_1 = arith.constant 0 : i32
    return %c0_i32, %c0_i32_0 : i32, i32
  }
  func.func @transform_5(%arg0: i32, %arg1: i32) -> (i32, i32) {
    %c0_i32 = arith.constant 0 : i32
    %c0_i32_0 = arith.constant 0 : i32
    %c0_i32_1 = arith.constant 0 : i32
    return %c0_i32, %c0_i32_0 : i32, i32
  }
  func.func @transform_6(%arg0: i32, %arg1: i32) -> (i32, i32, i32) {
    %c0_i32 = arith.constant 0 : i32
    %c0_i32_0 = arith.constant 0 : i32
    return %arg0, %arg1, %c0_i32 : i32, i32, i32
  }
  func.func @transform_7(%arg0: i32, %arg1: i32) -> (i32, i32, i32) {
    %c0_i32 = arith.constant 0 : i32
    %c0_i32_0 = arith.constant 0 : i32
    return %arg0, %arg1, %c0_i32 : i32, i32, i32
  }
}

</mosaic_0001>

<bundles_post_ra>
// kernel: tpu_custom_call.1
= control target key start
LH: loop header
LB: loop body
LE: loop exit
PB: predicated region body
PF: predicated region fallthrough
CT: control target
= control target key end

     0   :  { %s1496_s0 = inlined_call_operand.hbm [shape: bf16[2,8,32], index: 0, kind: input, shape index: {}]   ;;  %s1497_s1 = inlined_call_operand.hbm [shape: bf16[2,8,32], index: 1, kind: input, shape index: {}]   ;;  %s1498_s2 = inlined_call_operand.hbm [shape: bf16[32,128], index: 2, kind: input, shape index: {}]   ;;  %s1499_s3 = inlined_call_operand.vmem [shape: f32[1,128], index: 3, kind: input, shape index: {}]   ;;  %s1500_s4 = inlined_call_operand.hbm [shape: bf16[32,128], index: 4, kind: input, shape index: {}]   ;;  %s1501_s5 = inlined_call_operand.vmem [shape: f32[1,128], index: 5, kind: input, shape index: {}]   ;;  %s1502_s6 = inlined_call_operand.hbm [shape: bf16[2,8,128], index: 6, kind: output, shape index: {0}]   ;;  %s1503_s7 = inlined_call_operand.hbm [shape: bf16[2,8,128], index: 7, kind: output, shape index: {1}]  }
   0x1   :  { %1511 = sst [smem:[#allocation23_spill]] %s1498_s2 }
   0x2   :  { %1512 = sst [smem:[#allocation24_spill]] %s1500_s4 }
   0x3   :  { %13 = vsyncpa [#allocation3], 0 }
   0x4   :  { %15 = vsyncpa [#allocation3 + $0x1], 0 }
   0x5   :  { %16 = vsyncpa [#allocation6], 0 }
   0x6   :  { %18 = vsyncpa [#allocation6 + $0x1], 0 }
   0x7   :  { %19 = vsyncpa [#allocation9], 0 }
   0x8   :  { %20 = vsyncpa [#allocation4], 0 }
   0x9   :  { %22 = vsyncpa [#allocation4 + $0x1], 0 }
   0xa   :  { %23 = vsyncpa [#allocation12], 0 }
   0xb   :  { %25 = vsyncpa [#allocation12 + $0x1], 0  ;;  %s1171_s24 = smov 0   ;;  %s1173_s25 = smov 0  }
   0xc   :  { %s1175_s26 = smov 0   ;;  %s1177_s27 = smov 0  }
   0xd   :  { %s1179_s28 = smov 0   ;;  %s1181_s29 = smov 0  }
   0xe LB: > { %1513 = sst [smem:[#allocation19_spill]] %s1115_s28  ;;  %s1202_s30 = sadd.s32 4294967295, %s1119_s29   ;;  %s1119_s29 = sphi %s1181_s29, %s31_s29   ;;  %s1115_s28 = sphi %s1179_s28, %s1538_s28   ;;  %s1111_s27 = sphi %s1177_s27, %s1537_s27   ;;  %s1107_s26 = sphi %s1175_s26, %s1541_s26   ;;  %s1103_s25 = sphi %s1173_s25, %s1540_s25   ;;  %s1099_s24 = sphi %s1171_s24, %s1539_s24  }
   0xf   : > { %s724_s8 = sadd.s32 4294967294, %s1119_s29   ;;  %p65_p0 = scmp.ne.s32.totalorder %s1103_s25, %s1099_s24 }
  0x10   : > { %p1504_p1 = scmp.eq.s32.totalorder %s1202_s30, 0  ;;  %p209_p3 = scmp.eq.s32.totalorder %s724_s8, 1 }
  0x11   : > { %p725_p5 = scmp.ge.s32.totalorder %s1119_s29, 1  ;;  %p244_p7 = scmp.lt.s32.totalorder %s1119_s29, 3 }
  0x12   : > { %p1211_p4 = por %p1504_p1, %p65_p0  ;;  %p1216_p6 = por %p209_p3, %p65_p0 }
  0x13   : > { %p1221_p8 = pnand %p725_p5, %p244_p7  ;;  %s1121_s12 = smov [#allocation7]  }
  0x14   : > { %s1514_s9 = scalar_select %p1211_p4, 1, 0 }
  0x15   : > { %s1515_s10 = scalar_select %p1216_p6, 1, 0 }
  0x16   : > { %s1517_s11 = scalar_select %p1221_p8, 1, 0 }
  0x17   : > { %1516 = sst [smem:[#allocation20_spill]] %s1515_s10  ;;  %s256_s13 = sshll.u32 %s1121_s12, 4  ;;  %s1225_s13 = int_to_ptr.vmem [resolvable:$true] %s256_s13 }
  0x18   : > { %p792_p9 = pneg %p1221_p8  ;;  %s1122_s15 = smov [#allocation8]  }
  0x19   : > { %s272_s16 = sshll.u32 %s1122_s15, 4  ;;  %s1519_s2 = sld [smem:[#allocation23_spill]]  ;;  %s1236_s16 = int_to_ptr.vmem [resolvable:$true] %s272_s16 }
  0x1a   : > { %p1232_p11 = pnand %p792_p9, %p1504_p1 }
  0x1c   : > { %p879_p13 = pneg %p1232_p11 }
  0x1f   : > { %s877_s19 = scalar_lea.hbm %s1519_s2, 256 }
  0x20   : > { %p878_p12 = scmp.ne.s32.totalorder %s1519_s2, %s877_s19  ;;  %p884_p5 = scmp.lt.u32.totalorder %s877_s19, %s1519_s2 }
  0x22   : > { %p880_p0 = pnand %p879_p13, %p878_p12 }
  0x24   : > { %p881_p3 = pneg %p880_p0 }
  0x26   : > { %p886_p7 = pnand %p884_p5, %p881_p3 }
  0x28   : > { %889 = shalt.err (!%p886_p7)
}
  0x29   : > { %s890_s8 = scalar_lea.vmem %s1225_s13, 256  ;;  %p898_p2 = scmp.lt.s32.totalorder %s1225_s13, %s1225_s13 }
  0x2a   : > { %p891_p9 = scmp.ne.s32.totalorder %s1225_s13, %s890_s8  ;;  %p899_p12 = scmp.lt.s32.totalorder %s890_s8, %s890_s8 }
  0x2c   : > { %p893_p10 = pnand %p891_p9, %p879_p13  ;;  %p900_p0 = por %p899_p12, %p898_p2 }
  0x2e   : > { %p894_p1 = pneg %p893_p10 }
  0x30   : > { %p901_p6 = pnand %p900_p0, %p894_p1 }
  0x32   : > { %904 = shalt.err (!%p901_p6)
}
  0x33   : > { %s1123_s12 = smov 64   ;;  %s1124_s15 = smov 4  }
  0x34   : > { %795 = dma.hbm_to_vmem [thread:$0]  (!%p1232_p11), %s1519_s2, 256, %s1225_s13, [#allocation6], %s1123_s12, %s1123_s12, %s1124_s15  }
  0x35   : > { %s1520_s4 = sld [smem:[#allocation24_spill]] }
  0x3b   : > { %s905_s21 = scalar_lea.hbm %s1520_s4, 256 }
  0x3c   : > { %p906_p2 = scmp.ne.s32.totalorder %s1520_s4, %s905_s21  ;;  %p912_p10 = scmp.lt.u32.totalorder %s905_s21, %s1520_s4 }
  0x3e   : > { %p908_p1 = pnand %p906_p2, %p879_p13 }
  0x40   : > { %p909_p6 = pneg %p908_p1 }
  0x42   : > { %p914_p3 = pnand %p912_p10, %p909_p6 }
  0x44   : > { %917 = shalt.err (!%p914_p3)
}
  0x45   : > { %s918_s13 = scalar_lea.vmem %s1236_s16, 256  ;;  %p926_p12 = scmp.lt.s32.totalorder %s1236_s16, %s1236_s16 }
  0x46   : > { %p919_p5 = scmp.ne.s32.totalorder %s1236_s16, %s918_s13  ;;  %p927_p0 = scmp.lt.s32.totalorder %s918_s13, %s918_s13 }
  0x48   : > { %p921_p7 = pnand %p919_p5, %p879_p13  ;;  %p928_p2 = por %p927_p0, %p926_p12 }
  0x4a   : > { %p922_p9 = pneg %p921_p7 }
  0x4c   : > { %p929_p1 = pnand %p928_p2, %p922_p9 }
  0x4e   : > { %932 = shalt.err (!%p929_p1)
}
  0x4f   : > { %798 = dma.hbm_to_vmem [thread:$0]  (!%p1232_p11), %s1520_s4, 256, %s1236_s16, [#allocation9], %s1123_s12, %s1123_s12, %s1124_s15  }
  0x50   : > { %s43_s18 = sadd.s32 1, %s1115_s28  ;;  %s52_s19 = sadd.s32 1, %s1107_s26 }
  0x51   : > { %p45_p13 = scmp.ge.s32.totalorder %s43_s18, 2  ;;  %p59_p6 = scmp.ne.s32.totalorder %s1107_s26, %s1103_s25 }
  0x52   : > { %p60_p10 = scmp.eq.s32.totalorder %s1119_s29, 0  ;;  %p815_p3 = scmp.lt.s32.totalorder %s1119_s29, 2 }
  0x53   : > { %s1543_s18 = smov (%p45_p13, %s43_s18), 0  ;;  %p1522_p7 = scmp.eq.s32.totalorder %s1202_s30, 1 }
  0x54   : > { %1521 = sst [smem:[#allocation21_spill]] %s1543_s18  ;;  %p61_p5 = por %p60_p10, %p59_p6 }
  0x55   : > { %p1300_p9 = por %p1522_p7, %p59_p6  ;;  %s47_s20 = ssub.s32 %s1115_s28, %s1543_s18 }
  0x56   : > { %s289_s21 = sand.u32 1, %s1107_s26   ;;  %p50_p12 = scmp.eq.s32.totalorder %s47_s20, 0 }
  0x57   : > { %s1523_s14 = scalar_select %p1300_p9, 1, 0 }
  0x58   : > { %s1307_s16 = sshll.u32 %s289_s21, 2  ;;  %s730_s12 = sshll.u32 %s1115_s28, 6 }
  0x59   : > { %s1311_s15 = scalar_select %p50_p12, %s1107_s26, %s52_s19  }
  0x5a   : > { %s1316_s8 = scalar_lea.hbm %s1496_s0, %s730_s12  ;;  %s293_s13 = scalar_lea.vmem [#allocation2], %s1307_s16 }
  0x5b   : > { %1524 = sst [smem:[#allocation22_spill]] %s1311_s15  ;;  %s301_s10 = sshll.u32 %s293_s13, 4  ;;  %s1325_s10 = int_to_ptr.vmem [resolvable:$true] %s301_s10 }
  0x5c   : > { %p1321_p11 = pnand %p815_p3, %p61_p5  ;;  %s1330_s22 = scalar_lea.hbm %s1497_s1, %s730_s12 }
  0x5d   : > { %s290_s23 = scalar_lea.sflag [#allocation3], %s289_s21  ;;  %s933_s2 = scalar_lea.hbm %s1316_s8, 64 }
  0x5e   : > { %p934_p0 = scmp.ne.s32.totalorder %s1316_s8, %s933_s2  ;;  %p935_p2 = pneg %p1321_p11 }
  0x5f   : > { %s938_s18 = scalar_lea.hbm %s1496_s0, 128  ;;  %p939_p6 = scmp.lt.u32.totalorder %s1316_s8, %s1496_s0 }
  0x60   : > { %p936_p1 = pnand %p935_p2, %p934_p0  ;;  %p940_p10 = scmp.lt.u32.totalorder %s938_s18, %s933_s2 }
  0x61   : > { %p942_p5 = scmp.lt.u32.totalorder %s933_s2, %s1316_s8 }
  0x62   : > { %p937_p13 = pneg %p936_p1  ;;  %p941_p3 = por %p940_p10, %p939_p6 }
  0x64   : > { %p943_p7 = por %p942_p5, %p941_p3 }
  0x66   : > { %p944_p12 = pnand %p943_p7, %p937_p13 }
  0x68   : > { %947 = shalt.err (!%p944_p12)
}
  0x69   : > { %s948_s21 = scalar_lea.vmem %s1325_s10, 64  ;;  %s1125_s4 = smov [#allocation2]  }
  0x6a   : > { %p949_p0 = scmp.ne.s32.totalorder %s1325_s10, %s948_s21  ;;  %s953_s12 = sshll.u32 %s1125_s4, 4  ;;  %s954_s12 = int_to_ptr.vmem [resolvable:$false] %s953_s12 }
  0x6b   : > { %s955_s28 = scalar_lea.vmem %s954_s12, 128  ;;  %p956_p4 = scmp.lt.s32.totalorder %s1325_s10, %s954_s12 }
  0x6c   : > { %p951_p1 = pnand %p949_p0, %p935_p2  ;;  %p957_p6 = scmp.lt.s32.totalorder %s955_s28, %s948_s21 }
  0x6e   : > { %p952_p9 = pneg %p951_p1  ;;  %p958_p10 = por %p957_p6, %p956_p4 }
  0x70   : > { %p959_p3 = pnand %p958_p10, %p952_p9 }
  0x72   : > { %962 = shalt.err (!%p959_p3)
}
  0x73   : > { %802 = dma.hbm_to_vmem [thread:$0]  (!%p1321_p11), %s1316_s8, 64, %s1325_s10, %s290_s23  }
  0x74   : > { %s308_s2 = sand.u32 1, %s1119_s29   ;;  %s312_s18 = scalar_lea.vmem [#allocation5], %s1307_s16 }
  0x75   : > { %s320_s15 = sshll.u32 %s312_s18, 4  ;;  %s309_s19 = scalar_lea.sflag [#allocation6], %s308_s2  ;;  %s321_s15 = int_to_ptr.vmem [resolvable:$true] %s320_s15 }
  0x76   : > { %s963_s20 = scalar_lea.hbm %s1330_s22, 64  ;;  %s968_s4 = scalar_lea.hbm %s1497_s1, 128 }
  0x77   : > { %p964_p4 = scmp.ne.s32.totalorder %s1330_s22, %s963_s20  ;;  %p969_p5 = scmp.lt.u32.totalorder %s1330_s22, %s1497_s1 }
  0x78   : > { %p970_p7 = scmp.lt.u32.totalorder %s968_s4, %s963_s20  ;;  %p972_p0 = scmp.lt.u32.totalorder %s963_s20, %s1330_s22 }
  0x79   : > { %p966_p9 = pnand %p964_p4, %p935_p2 }
  0x7a   : > { %p971_p12 = por %p970_p7, %p969_p5 }
  0x7b   : > { %p967_p13 = pneg %p966_p9 }
  0x7c   : > { %p973_p1 = por %p972_p0, %p971_p12 }
  0x7e   : > { %p974_p6 = pnand %p973_p1, %p967_p13 }
  0x80   : > { %977 = shalt.err (!%p974_p6)
}
  0x81   : > { %s978_s16 = scalar_lea.vmem %s321_s15, 64  ;;  %s1126_s8 = smov [#allocation5]  }
  0x82   : > { %p979_p10 = scmp.ne.s32.totalorder %s321_s15, %s978_s16  ;;  %s983_s10 = sshll.u32 %s1126_s8, 4  ;;  %s984_s10 = int_to_ptr.vmem [resolvable:$false] %s983_s10 }
  0x83   : > { %s985_s23 = scalar_lea.vmem %s984_s10, 128  ;;  %p986_p9 = scmp.lt.s32.totalorder %s321_s15, %s984_s10 }
  0x84   : > { %p981_p3 = pnand %p979_p10, %p935_p2  ;;  %p987_p8 = scmp.lt.s32.totalorder %s985_s23, %s978_s16 }
  0x86   : > { %p982_p4 = pneg %p981_p3  ;;  %p988_p5 = por %p987_p8, %p986_p9 }
  0x88   : > { %p989_p7 = pnand %p988_p5, %p982_p4 }
  0x8a   : > { %992 = shalt.err (!%p989_p7)
}
  0x8b   : > { %805 = dma.hbm_to_vmem [thread:$0]  (!%p1321_p11), %s1330_s22, 64, %s321_s15, %s309_s19  }
  0x8c   : > { %p1526_p13 = scmp.ne.s32.totalorder %s1517_s11, 0 }
  0x8d   : > { %s1381_s2 = sand.u32 (!%p1526_p13), 1, %s1103_s25   ;;  %p1527_p8 = scmp.ne.s32.totalorder (!%p1526_p13), %s1514_s9, 0 }
  0x8e   : > { %329 = sbr.rel (%p1526_p13) target bundleno = 423 (0x1a7), region = 44  ;;  %s1384_s18 = sshll.u32 (!%p1526_p13), %s1381_s2, 2 }
  0x8f   : > { %s332_s20 = scalar_lea.sflag (!%p1526_p13), [#allocation3], %s1381_s2  ;;  %s335_s13 = scalar_lea.vmem (!%p1526_p13), [#allocation2], %s1384_s18 }
  0x95   : > { %1074 = dma.done.wait (%p1527_p8), %s332_s20, 64  }
  0x96   : > { %1076 = vsyncadd (%p1527_p8), %s332_s20, 4294967232  ;;  %s340_s11 = sand.u32 1, %s1202_s30   ;;  %s344_s22 = scalar_lea.vmem [#allocation5], %s1384_s18 }
  0x97   : > { %s341_s17 = scalar_lea.sflag [#allocation6], %s340_s11 }
  0x98   : > { %1078 = dma.done.wait (%p1527_p8), %s341_s17, 64  }
  0x99   : > { %1080 = vsyncadd (%p1527_p8), %s341_s17, 4294967232  ;;  %p1528_p11 = scmp.eq.s32.totalorder %s1202_s30, 0 }
  0x9b   : > { %1082 = dma.done.wait (%p1528_p11), [#allocation6], 256   ;;  %p1529_p2 = pmov %p1528_p11 }
  0x9d   : > { %1084 = vsyncadd (%p1529_p2), [#allocation6], 4294967040  ;;  %p1530_p12 = pmov %p1529_p2 }
  0x9e   : > { %p1531_p0 = pmov %p1529_p2 }
  0x9f   : > { %1086 = dma.done.wait (%p1530_p12), [#allocation9], 256  }
  0xa0   : > { %1088 = vsyncadd (%p1531_p0), [#allocation9], 4294967040  ;;  %v1127_v0 = vmov 0.0   ;;  %vm1128_vm0 = vmmov 0   ;;  %v873_v1 = vld [vmem:[#allocation7] sm:$0xff]   ;;  %v874_v2 = vld [vmem:[#allocation8] sm:$0xff]  }
  0xa1   : > { %760 = vmatprep.subr.bf16.mxu0 %v1127_v0  ;;  %768 = vmatprep.subr.bf16.mxu1 %v1127_v0  ;;  %v875_v3 = vld [vmem:[#allocation7 + $0x8] sm:$0xff]   ;;  %v876_v4 = vld [vmem:[#allocation8 + $0x8] sm:$0xff]   ;;  %v394_v5 = vld [vmem:[%s335_s13] sm:$0xf]  ;;  %vm419_vm1 = vcmask 261120   ;;  %s750_s21 = sshll.u32 %s1111_s27, 6 }
  0xa2   : > { %764 = vmatprep.mubr.msk.bf16.mxu0 %vm1128_vm0, %v1127_v0  ;;  %772 = vmatprep.mubr.msk.bf16.mxu1 %vm1128_vm0, %v1127_v0  ;;  %v395_v6 = vld [vmem:[%s344_s22] sm:$0xf]  ;;  %v740_v7 = vld [vmem:[%s1499_s3] ss:$0 sm:$0xff]  ;;  %s385_s4 = scalar_lea.vmem [#allocation10], %s1384_s18  ;;  %s392_s28 = scalar_lea.vmem [#allocation11], %s1384_s18 }
  0xa3   : > { %761 = vmatpush3.bf16.msra.mxu0 %v873_v1  ;;  %769 = vmatpush3.bf16.msra.mxu1 %v874_v2  ;;  %v744_v8 = vld [vmem:[%s1501_s5] ss:$0 sm:$0xff]  ;;  %s553_s12 = sshll.u32 %s385_s4, 4  ;;  %s567_s16 = sshll.u32 %s392_s28, 4  ;;  %s1420_s12 = int_to_ptr.vmem [resolvable:$true] %s553_s12  ;;  %s1427_s16 = int_to_ptr.vmem [resolvable:$true] %s567_s16 }
  0xa4   : > { %762 = vmatprep.subr.bf16.mxu0 %v1127_v0  ;;  %770 = vmatprep.subr.bf16.mxu1 %v1127_v0  ;;  %s1418_s23 = scalar_lea.hbm %s1502_s6, %s750_s21  ;;  %s1425_s20 = scalar_lea.hbm %s1503_s7, %s750_s21 }
  0xa5   : > { %s534_s13 = scalar_lea.sflag [#allocation4], %s1381_s2  ;;  %s993_s11 = scalar_lea.vmem %s1420_s12, 64 }
  0xa6   : > { %p994_p1 = scmp.ne.s32.totalorder %s1420_s12, %s993_s11  ;;  %p1532_p6 = scmp.ne.s32.totalorder %s1523_s14, 0 }
  0xa7   : > { %763 = vmatpush3.bf16.msra.mxu0 %v875_v3  ;;  %771 = vmatpush3.bf16.msra.mxu1 %v876_v4  ;;  %s1129_s17 = smov [#allocation10]  }
  0xa8   : > { %p995_p10 = pnand %p994_p1, %p1532_p6  ;;  %s997_s22 = sshll.u32 %s1129_s17, 4  ;;  %s998_s22 = int_to_ptr.vmem [resolvable:$false] %s997_s22 }
  0xa9   : > { %s999_s30 = scalar_lea.vmem %s998_s22, 128  ;;  %p1000_p4 = scmp.lt.s32.totalorder %s1420_s12, %s998_s22 }
  0xaa   : > { %765 = vmatmul.mubr.msk.bf16.vlgmr.msra.gmra.mrb[0].mxu0 %vm419_vm1, %v394_v5  ;;  %773 = vmatmul.mubr.msk.bf16.vlgmr.msra.gmra.mrb[0].mxu1 %vm419_vm1, %v395_v6  ;;  %p996_p3 = pneg %p995_p10  ;;  %p1001_p9 = scmp.lt.s32.totalorder %s999_s30, %s993_s11 }
  0xac   : > { %p1002_p5 = por %p1001_p9, %p1000_p4 }
  0xae   : > { %p1003_p7 = pnand %p1002_p5, %p996_p3 }
 0x17d   : > { %v457_v9 = vpop.f32.mrb[0].mxu0  ;;  %v523_v11 = vpop.f32.mrb[0].mxu1 }
 0x17e   : > { %v458_v10 = vadd.f32 %v740_v7, %v457_v9  ;;  %v766_v12 = vpop.f32.mrb[1].mxu0  ;;  %v524_v13 = vadd.f32 %v744_v8, %v523_v11  ;;  %v774_v14 = vpop.f32.mrb[1].mxu1 }
 0x17f   : > { %v460_v15 = vpop.f32.mrb[2].mxu0  ;;  %v526_v17 = vpop.f32.mrb[2].mxu1 }
 0x180   : > { %v529_v16 = vpack.c.bf16 %v458_v10, %v458_v10  ;;  %v767_v18 = vpop.f32.mrb[3].mxu0  ;;  %v531_v19 = vpack.c.bf16 %v524_v13, %v524_v13  ;;  %v775_v20 = vpop.f32.mrb[3].mxu1 }
 0x182   : > { %530 = vst [vmem:[%s385_s4] sm:$0xf] %v529_v16  ;;  %532 = vst [vmem:[%s392_s28] sm:$0xf] %v531_v19 }
 0x183   : > { %1006 = shalt.err (!%p1003_p7)
}
 0x184   : > { %s1007_s9 = scalar_lea.hbm %s1418_s23, 64  ;;  %s1011_s21 = scalar_lea.hbm %s1502_s6, 128 }
 0x185   : > { %p1008_p13 = scmp.ne.s32.totalorder %s1418_s23, %s1007_s9  ;;  %p1012_p2 = scmp.lt.u32.totalorder %s1418_s23, %s1502_s6 }
 0x186   : > { %p1013_p12 = scmp.lt.u32.totalorder %s1011_s21, %s1007_s9  ;;  %p1015_p1 = scmp.lt.u32.totalorder %s1007_s9, %s1418_s23 }
 0x187   : > { %p1009_p8 = pnand %p1008_p13, %p1532_p6 }
 0x188   : > { %p1014_p0 = por %p1013_p12, %p1012_p2 }
 0x189   : > { %p1010_p11 = pneg %p1009_p8 }
 0x18a   : > { %p1016_p10 = por %p1015_p1, %p1014_p0 }
 0x18c   : > { %p1017_p3 = pnand %p1016_p10, %p1010_p11 }
 0x18e   : > { %1020 = shalt.err (!%p1017_p3)
}
 0x18f   : > { %788 = dma.vmem_to_hbm [thread:$0]  (%p1532_p6), %s1420_s12, 64, %s1418_s23, %s534_s13  }
 0x190   : > { %s539_s8 = scalar_lea.sflag [#allocation12], %s1381_s2  ;;  %s1021_s10 = scalar_lea.vmem %s1427_s16, 64 }
 0x191   : > { %p1022_p4 = scmp.ne.s32.totalorder %s1427_s16, %s1021_s10  ;;  %s1130_s27 = smov [#allocation11]  }
 0x192   : > { %s1025_s18 = sshll.u32 %s1130_s27, 4  ;;  %s1026_s18 = int_to_ptr.vmem [resolvable:$false] %s1025_s18 }
 0x193   : > { %p1023_p9 = pnand %p1022_p4, %p1532_p6  ;;  %s1027_s11 = scalar_lea.vmem %s1026_s18, 128 }
 0x194   : > { %p1028_p7 = scmp.lt.s32.totalorder %s1427_s16, %s1026_s18  ;;  %p1029_p13 = scmp.lt.s32.totalorder %s1027_s11, %s1021_s10 }
 0x195   : > { %p1024_p5 = pneg %p1023_p9 }
 0x196   : > { %p1030_p8 = por %p1029_p13, %p1028_p7 }
 0x198   : > { %p1031_p11 = pnand %p1030_p8, %p1024_p5 }
 0x19a   : > { %1034 = shalt.err (!%p1031_p11)
}
 0x19b   : > { %s1035_s2 = scalar_lea.hbm %s1425_s20, 64  ;;  %s1039_s13 = scalar_lea.hbm %s1503_s7, 128 }
 0x19c   : > { %p1036_p2 = scmp.ne.s32.totalorder %s1425_s20, %s1035_s2  ;;  %p1040_p1 = scmp.lt.u32.totalorder %s1425_s20, %s1503_s7 }
 0x19d   : > { %p1041_p10 = scmp.lt.u32.totalorder %s1039_s13, %s1035_s2  ;;  %p1043_p4 = scmp.lt.u32.totalorder %s1035_s2, %s1425_s20 }
 0x19e   : > { %p1037_p12 = pnand %p1036_p2, %p1532_p6 }
 0x19f   : > { %p1042_p3 = por %p1041_p10, %p1040_p1 }
 0x1a0   : > { %p1038_p0 = pneg %p1037_p12 }
 0x1a1   : > { %p1044_p9 = por %p1043_p4, %p1042_p3 }
 0x1a3   : > { %p1045_p5 = pnand %p1044_p9, %p1038_p0 }
 0x1a5   : > { %1048 = shalt.err (!%p1045_p5)
}
 0x1a6   : > { %789 = dma.vmem_to_hbm [thread:$0]  (%p1532_p6), %s1427_s16, 64, %s1425_s20, %s539_s8  }
 0x1a7 PF: > { %s1533_s30 = sld [smem:[#allocation20_spill]]  ;;  %s579_s9 = sand.u32 1, %s1099_s24  }
 0x1a8   : > { %p1535_p13 = scmp.ge.s32.totalorder %s1119_s29, 2  ;;  %s580_s15 = scalar_lea.sflag [#allocation4], %s579_s9 }
 0x1ad   : > { %p1534_p7 = scmp.ne.s32.totalorder %s1533_s30, 0 }
 0x1af   : > { %p807_p8 = pnand %p1535_p13, %p1534_p7 }
 0x1b1   : > { %1090 = dma.done.wait (!%p807_p8), %s580_s15, 64  }
 0x1b2   : > { %1092 = vsyncadd (!%p807_p8), %s580_s15, 4294967232  ;;  %s589_s19 = scalar_lea.sflag [#allocation12], %s579_s9 }
 0x1b3   : > { %1094 = dma.done.wait (!%p807_p8), %s589_s19, 64  }
 0x1b4   : > { %1096 = vsyncadd (!%p807_p8), %s589_s19, 4294967232  ;;  %s31_s29 = sadd.s32 1, %s1119_s29   ;;  %s1536_s14 = sld [smem:[#allocation22_spill]] }
 0x1b5   : > { %p28_p11 = scmp.ge.s32.totalorder %s31_s29, 4   ;;  %s1537_s27 = sld [smem:[#allocation19_spill]] }
 0x1b6   : > { %s1538_s28 = sld [smem:[#allocation21_spill]]  ;;  %s1539_s24 = smov %s1103_s25 }
 0x1b7   : > { %s1540_s25 = smov %s1107_s26  ;;  %30 = sbr.rel (!%p28_p11) target bundleno = 14 (0xe), region = 127 }
 0x1ba   : > { %s1541_s26 = smov %s1536_s14 }
 0x1be   :  { %594 = vsyncpa [#allocation3], 1 }
 0x1bf   :  { %596 = vsyncpa [#allocation3 + $0x1], 1 }
 0x1c0   :  { %597 = vsyncpa [#allocation6], 1 }
 0x1c1   :  { %599 = vsyncpa [#allocation6 + $0x1], 1 }
 0x1c2   :  { %600 = vsyncpa [#allocation9], 1 }
 0x1c3   :  { %601 = vsyncpa [#allocation4], 1 }
 0x1c4   :  { %603 = vsyncpa [#allocation4 + $0x1], 1 }
 0x1c5   :  { %604 = vsyncpa [#allocation12], 1 }
 0x1c6   :  { %606 = vsyncpa [#allocation12 + $0x1], 1 }

</bundles_post_ra>
